<compile_context>
chip_gen: v7x
topology: tpu7x:2x2x1
jax: 0.10.0
libtpu: 0.0.40
codegen_flags: <defaults>
</compile_context>

<pallas_src>
import functools

import jax
import jax.numpy as jnp
from jax.experimental import pallas as pl
from jax.experimental.pallas import tpu as pltpu


def _split_heads(slab, batch, seq, heads, dim_head):
    """(b*n, heads*dh) lane-packed -> (heads*b, n, dh) batched over (head, batch).

    Each per-head piece is a static lane slice; the reshape (b*n, dh) -> (b, n, dh) is a
    layout-preserving leading-dim split, and the concat is along a major axis only.
    """
    parts = [
        slab[:, hh * dim_head:(hh + 1) * dim_head].reshape(batch, seq, dim_head)
        for hh in range(heads)
    ]
    return jnp.concatenate(parts, axis=0)          # (heads*batch, seq, dim_head)


def _attention_kernel(x_ref, wqkv_ref, wo_ref, bo_ref, o_ref, cat_ref, *,
                      batch, seq, heads, dim_head):
    """Fused attention forward, single grid step.

    x_ref    : (b*n, dim)        flattened input tokens (f32)
    wqkv_ref : (dim, 3*inner)    fused QKV weights, scale folded into the q columns
    wo_ref   : (inner, dim)      output projection weights
    bo_ref   : (1, dim)          output projection bias
    o_ref    : (b*n, dim)        output tokens
    cat_ref  : (b*n, inner)      VMEM scratch holding the lane-packed head outputs
    """
    inner = heads * dim_head
    x = x_ref[...]                                                     # (b*n, dim)

    # (1) Fused QKV projection: one (b*n, dim) @ (dim, 3*inner) MXU matmul whose output
    #     lane width (3*inner = 384) is a multiple of 128.
    qkv = jnp.dot(x, wqkv_ref[...], preferred_element_type=jnp.float32)

    q = _split_heads(qkv[:, 0 * inner:1 * inner], batch, seq, heads, dim_head)
    k = _split_heads(qkv[:, 1 * inner:2 * inner], batch, seq, heads, dim_head)
    v = _split_heads(qkv[:, 2 * inner:3 * inner], batch, seq, heads, dim_head)

    # (2) Scores + numerically-stable softmax, batched over all b*h (head, batch)
    #     groups in a single flash-style einsum pair.  The 1/sqrt(dh) scale is already
    #     folded into W_q, so no per-element multiply here.
    sim = jnp.einsum('gid,gjd->gij', q, k,
                     preferred_element_type=jnp.float32)               # (b*h, n, n)
    sim = sim - jnp.max(sim, axis=-1, keepdims=True)
    p = jnp.exp(sim)
    # Exact division keeps the 1e-5 match vs. the reference; at production sizes use
    # p * pl.reciprocal(denom, approx=True) to move the divide onto the EUP slot.
    p = p / jnp.sum(p, axis=-1, keepdims=True)
    out = jnp.einsum('gij,gjd->gid', p, v,
                     preferred_element_type=jnp.float32)               # (b*h, n, dh)

    # (3) Repack heads along lanes into the (b*n, inner=128) scratch slab (matches the
    #     'b h n d -> b n (h d)' rearrange), then ONE K=128 output-projection matmul.
    for hh in range(heads):
        cat_ref[:, hh * dim_head:(hh + 1) * dim_head] = (
            out[hh * batch:(hh + 1) * batch].reshape(batch * seq, dim_head))
    y = jnp.dot(cat_ref[...], wo_ref[...],
                preferred_element_type=jnp.float32) + bo_ref[...]      # (b*n, dim)
    o_ref[...] = y.astype(o_ref.dtype)
    # TODO(synk): for long sequences, restructure to a flash-attention grid
    # (q-tile x kv-tile, online softmax with m/l/acc VMEM scratch) and set
    # vmem_limit_bytes; with dim=32 the final store is a 32/128-lane masked vst,
    # which only becomes worth fixing once dim itself is a multiple of 128.


@functools.partial(jax.jit, static_argnames=("heads", "dim_head"))
def attention_forward(params, x, *, heads, dim_head):
    """Fused Attention forward: ONE pallas_call, single step (no grid)."""
    w_qkv, w_out, b_out = params
    b, n, dim = x.shape
    inner = heads * dim_head
    x2d = x.reshape(b * n, dim)                     # fill sublanes with all b*n rows

    kernel = functools.partial(_attention_kernel,
                               batch=b, seq=n, heads=heads, dim_head=dim_head)
    vmem = pl.BlockSpec(memory_space=pltpu.MemorySpace.VMEM)   # whole array in VMEM
    y2d = pl.pallas_call(
        kernel,
        out_shape=jax.ShapeDtypeStruct((b * n, dim), x.dtype),
        in_specs=[vmem, vmem, vmem, vmem],          # x, W_qkv, W_out, b_out
        out_specs=vmem,
        scratch_shapes=[pltpu.VMEM((b * n, inner), jnp.float32)],
    )(x2d, w_qkv, w_out, b_out)
    return y2d.reshape(b, n, dim)


def init_attention_params(key, dim, heads=8, dim_head=16):
    """nn.Linear-style module weights (x @ W layout, i.e. already transposed)."""
    inner = heads * dim_head
    k_qkv, k_wo, k_bo = jax.random.split(key, 3)
    bound_qkv = 1.0 / (dim ** 0.5)
    w_qkv = jax.random.uniform(k_qkv, (dim, 3 * inner), jnp.float32,
                               -bound_qkv, bound_qkv)
    bound_out = 1.0 / (inner ** 0.5)
    w_out = jax.random.uniform(k_wo, (inner, dim), jnp.float32,
                               -bound_out, bound_out)
    b_out = jax.random.uniform(k_bo, (dim,), jnp.float32, -bound_out, bound_out)
    return {"w_qkv": w_qkv, "w_out": w_out, "b_out": b_out}


def pack_params(module_params, heads, dim_head):
    """One-time kernel layout: fold 1/sqrt(dh) into the W_q columns, bias as (1, dim)."""
    inner = heads * dim_head
    scale = float(dim_head) ** -0.5
    w_qkv = module_params["w_qkv"].at[:, :inner].multiply(scale)
    b_out = module_params["b_out"].reshape(1, -1).astype(jnp.float32)
    return (w_qkv, module_params["w_out"], b_out)


def attention_reference(module_params, x, heads, dim_head):
    """Pure-JAX transcription of the PyTorch Attention.forward (dropout p=0)."""
    w_qkv, w_out, b_out = (module_params["w_qkv"], module_params["w_out"],
                           module_params["b_out"])
    b, n, dim = x.shape
    inner = heads * dim_head
    qkv = x @ w_qkv
    q, k, v = jnp.split(qkv, 3, axis=-1)

    def rearr(t):                                   # 'b n (h d) -> b h n d'
        return t.reshape(b, n, heads, dim_head).transpose(0, 2, 1, 3)

    q, k, v = map(rearr, (q, k, v))
    sim = jnp.einsum('bhid,bhjd->bhij', q, k) * (float(dim_head) ** -0.5)
    attn = jax.nn.softmax(sim, axis=-1)
    out = jnp.einsum('bhij,bhjd->bhid', attn, v)
    out = out.transpose(0, 2, 1, 3).reshape(b, n, inner)   # 'b h n d -> b n (h d)'
    return out @ w_out + b_out


if __name__ == "__main__":
    # Module defaults: heads=8, dim_head=16 (inner_dim=128); small dim/seq/batch.
    dim, heads, dim_head = 32, 8, 16
    batch, seq = 2, 8

    key = jax.random.PRNGKey(0)
    kx, kp = jax.random.split(key)
    x = jax.random.normal(kx, (batch, seq, dim), jnp.float32)
    module_params = init_attention_params(kp, dim, heads=heads, dim_head=dim_head)
    kernel_params = pack_params(module_params, heads=heads, dim_head=dim_head)

    out = attention_forward(kernel_params, x, heads=heads, dim_head=dim_head)
    out = jax.block_until_ready(out)

    ref = attention_reference(module_params, x, heads=heads, dim_head=dim_head)
    assert out.shape == (batch, seq, dim), out.shape
    assert jnp.allclose(out, ref, atol=1e-5, rtol=1e-5), (
        "mismatch vs reference; max abs err = "
        f"{float(jnp.max(jnp.abs(out - ref)))}")

    print("KERNEL_OK")
</pallas_src>

<mosaic_0001>
module attributes {stable_mosaic.version = 11 : i64} {
  func.func @_attention_kernel(%arg0: memref<16x32xf32, #tpu.memory_space<vmem>>, %arg1: memref<32x384xf32, #tpu.memory_space<vmem>>, %arg2: memref<128x32xf32, #tpu.memory_space<vmem>>, %arg3: memref<1x32xf32, #tpu.memory_space<vmem>>, %arg4: memref<16x32xf32, #tpu.memory_space<vmem>>, %arg5: memref<16x128xf32, #tpu.memory_space<vmem>>) attributes {dimension_semantics = [], scalar_prefetch = 0 : i64, scratch_operands = 1 : i64, tpu.core_type = #tpu.core_type<tc>} {
    %c0 = arith.constant 0 : index
    %c0_0 = arith.constant 0 : index
    %0 = vector.load %arg0[%c0, %c0_0] : memref<16x32xf32, #tpu.memory_space<vmem>>, vector<16x32xf32>
    %c0_1 = arith.constant 0 : index
    %c0_2 = arith.constant 0 : index
    %1 = vector.load %arg1[%c0_1, %c0_2] : memref<32x384xf32, #tpu.memory_space<vmem>>, vector<32x384xf32>
    %cst = arith.constant dense<0.000000e+00> : vector<16x384xf32>
    %2 = tpu.matmul %0, %1, %cst {dimension_numbers = #tpu.dot_dimension_numbers<[1], [0], [0], [1], [0, 0, 1, 1], [], []>} : vector<16x32xf32>, vector<32x384xf32>, vector<16x384xf32> -> vector<16x384xf32>
    %3 = vector.extract_strided_slice %2 {offsets = [0, 0], sizes = [16, 128], strides = [1, 1]} : vector<16x384xf32> to vector<16x128xf32>
    %4 = vector.extract_strided_slice %3 {offsets = [0, 0], sizes = [16, 16], strides = [1, 1]} : vector<16x128xf32> to vector<16x16xf32>
    %5 = vector.shape_cast %4 : vector<16x16xf32> to vector<2x8x16xf32>
    %6 = vector.extract_strided_slice %3 {offsets = [0, 16], sizes = [16, 16], strides = [1, 1]} : vector<16x128xf32> to vector<16x16xf32>
    %7 = vector.shape_cast %6 : vector<16x16xf32> to vector<2x8x16xf32>
    %8 = vector.extract_strided_slice %3 {offsets = [0, 32], sizes = [16, 16], strides = [1, 1]} : vector<16x128xf32> to vector<16x16xf32>
    %9 = vector.shape_cast %8 : vector<16x16xf32> to vector<2x8x16xf32>
    %10 = vector.extract_strided_slice %3 {offsets = [0, 48], sizes = [16, 16], strides = [1, 1]} : vector<16x128xf32> to vector<16x16xf32>
    %11 = vector.shape_cast %10 : vector<16x16xf32> to vector<2x8x16xf32>
    %12 = vector.extract_strided_slice %3 {offsets = [0, 64], sizes = [16, 16], strides = [1, 1]} : vector<16x128xf32> to vector<16x16xf32>
    %13 = vector.shape_cast %12 : vector<16x16xf32> to vector<2x8x16xf32>
    %14 = vector.extract_strided_slice %3 {offsets = [0, 80], sizes = [16, 16], strides = [1, 1]} : vector<16x128xf32> to vector<16x16xf32>
    %15 = vector.shape_cast %14 : vector<16x16xf32> to vector<2x8x16xf32>
    %16 = vector.extract_strided_slice %3 {offsets = [0, 96], sizes = [16, 16], strides = [1, 1]} : vector<16x128xf32> to vector<16x16xf32>
    %17 = vector.shape_cast %16 : vector<16x16xf32> to vector<2x8x16xf32>
    %18 = vector.extract_strided_slice %3 {offsets = [0, 112], sizes = [16, 16], strides = [1, 1]} : vector<16x128xf32> to vector<16x16xf32>
    %19 = vector.shape_cast %18 : vector<16x16xf32> to vector<2x8x16xf32>
    %20 = tpu.concatenate %5, %7, %9, %11, %13, %15, %17, %19 in 0 : vector<2x8x16xf32>, vector<2x8x16xf32>, vector<2x8x16xf32>, vector<2x8x16xf32>, vector<2x8x16xf32>, vector<2x8x16xf32>, vector<2x8x16xf32>, vector<2x8x16xf32> -> vector<16x8x16xf32>
    %21 = vector.extract_strided_slice %2 {offsets = [0, 128], sizes = [16, 128], strides = [1, 1]} : vector<16x384xf32> to vector<16x128xf32>
    %22 = vector.extract_strided_slice %21 {offsets = [0, 0], sizes = [16, 16], strides = [1, 1]} : vector<16x128xf32> to vector<16x16xf32>
    %23 = vector.shape_cast %22 : vector<16x16xf32> to vector<2x8x16xf32>
    %24 = vector.extract_strided_slice %21 {offsets = [0, 16], sizes = [16, 16], strides = [1, 1]} : vector<16x128xf32> to vector<16x16xf32>
    %25 = vector.shape_cast %24 : vector<16x16xf32> to vector<2x8x16xf32>
    %26 = vector.extract_strided_slice %21 {offsets = [0, 32], sizes = [16, 16], strides = [1, 1]} : vector<16x128xf32> to vector<16x16xf32>
    %27 = vector.shape_cast %26 : vector<16x16xf32> to vector<2x8x16xf32>
    %28 = vector.extract_strided_slice %21 {offsets = [0, 48], sizes = [16, 16], strides = [1, 1]} : vector<16x128xf32> to vector<16x16xf32>
    %29 = vector.shape_cast %28 : vector<16x16xf32> to vector<2x8x16xf32>
    %30 = vector.extract_strided_slice %21 {offsets = [0, 64], sizes = [16, 16], strides = [1, 1]} : vector<16x128xf32> to vector<16x16xf32>
    %31 = vector.shape_cast %30 : vector<16x16xf32> to vector<2x8x16xf32>
    %32 = vector.extract_strided_slice %21 {offsets = [0, 80], sizes = [16, 16], strides = [1, 1]} : vector<16x128xf32> to vector<16x16xf32>
    %33 = vector.shape_cast %32 : vector<16x16xf32> to vector<2x8x16xf32>
    %34 = vector.extract_strided_slice %21 {offsets = [0, 96], sizes = [16, 16], strides = [1, 1]} : vector<16x128xf32> to vector<16x16xf32>
    %35 = vector.shape_cast %34 : vector<16x16xf32> to vector<2x8x16xf32>
    %36 = vector.extract_strided_slice %21 {offsets = [0, 112], sizes = [16, 16], strides = [1, 1]} : vector<16x128xf32> to vector<16x16xf32>
    %37 = vector.shape_cast %36 : vector<16x16xf32> to vector<2x8x16xf32>
    %38 = tpu.concatenate %23, %25, %27, %29, %31, %33, %35, %37 in 0 : vector<2x8x16xf32>, vector<2x8x16xf32>, vector<2x8x16xf32>, vector<2x8x16xf32>, vector<2x8x16xf32>, vector<2x8x16xf32>, vector<2x8x16xf32>, vector<2x8x16xf32> -> vector<16x8x16xf32>
    %39 = vector.extract_strided_slice %2 {offsets = [0, 256], sizes = [16, 128], strides = [1, 1]} : vector<16x384xf32> to vector<16x128xf32>
    %40 = vector.extract_strided_slice %39 {offsets = [0, 0], sizes = [16, 16], strides = [1, 1]} : vector<16x128xf32> to vector<16x16xf32>
    %41 = vector.shape_cast %40 : vector<16x16xf32> to vector<2x8x16xf32>
    %42 = vector.extract_strided_slice %39 {offsets = [0, 16], sizes = [16, 16], strides = [1, 1]} : vector<16x128xf32> to vector<16x16xf32>
    %43 = vector.shape_cast %42 : vector<16x16xf32> to vector<2x8x16xf32>
    %44 = vector.extract_strided_slice %39 {offsets = [0, 32], sizes = [16, 16], strides = [1, 1]} : vector<16x128xf32> to vector<16x16xf32>
    %45 = vector.shape_cast %44 : vector<16x16xf32> to vector<2x8x16xf32>
    %46 = vector.extract_strided_slice %39 {offsets = [0, 48], sizes = [16, 16], strides = [1, 1]} : vector<16x128xf32> to vector<16x16xf32>
    %47 = vector.shape_cast %46 : vector<16x16xf32> to vector<2x8x16xf32>
    %48 = vector.extract_strided_slice %39 {offsets = [0, 64], sizes = [16, 16], strides = [1, 1]} : vector<16x128xf32> to vector<16x16xf32>
    %49 = vector.shape_cast %48 : vector<16x16xf32> to vector<2x8x16xf32>
    %50 = vector.extract_strided_slice %39 {offsets = [0, 80], sizes = [16, 16], strides = [1, 1]} : vector<16x128xf32> to vector<16x16xf32>
    %51 = vector.shape_cast %50 : vector<16x16xf32> to vector<2x8x16xf32>
    %52 = vector.extract_strided_slice %39 {offsets = [0, 96], sizes = [16, 16], strides = [1, 1]} : vector<16x128xf32> to vector<16x16xf32>
    %53 = vector.shape_cast %52 : vector<16x16xf32> to vector<2x8x16xf32>
    %54 = vector.extract_strided_slice %39 {offsets = [0, 112], sizes = [16, 16], strides = [1, 1]} : vector<16x128xf32> to vector<16x16xf32>
    %55 = vector.shape_cast %54 : vector<16x16xf32> to vector<2x8x16xf32>
    %56 = tpu.concatenate %41, %43, %45, %47, %49, %51, %53, %55 in 0 : vector<2x8x16xf32>, vector<2x8x16xf32>, vector<2x8x16xf32>, vector<2x8x16xf32>, vector<2x8x16xf32>, vector<2x8x16xf32>, vector<2x8x16xf32>, vector<2x8x16xf32> -> vector<16x8x16xf32>
    "tpu.trace_start"() <{level = 10 : i32, message = "gid,gjd->gij"}> : () -> ()
    %cst_3 = arith.constant dense<0.000000e+00> : vector<16x8x8xf32>
    %57 = tpu.matmul %20, %38, %cst_3 {dimension_numbers = #tpu.dot_dimension_numbers<[2], [2], [1], [1], [0, 0, 0, 1, 1, 1], [0], [0]>} : vector<16x8x16xf32>, vector<16x8x16xf32>, vector<16x8x8xf32> -> vector<16x8x8xf32>
    "tpu.trace_stop"() : () -> ()
    %cst_4 = arith.constant dense<0xFF800000> : vector<16x8xf32>
    %58 = vector.multi_reduction <maximumf>, %57, %cst_4 [2] : vector<16x8x8xf32> to vector<16x8xf32>
    %59 = vector.shape_cast %58 : vector<16x8xf32> to vector<16x8x1xf32>
    %60 = vector.broadcast %59 : vector<16x8x1xf32> to vector<16x8x8xf32>
    %61 = arith.subf %57, %60 : vector<16x8x8xf32>
    %62 = math.exp %61 : vector<16x8x8xf32>
    %cst_5 = arith.constant dense<0.000000e+00> : vector<16x8xf32>
    %63 = vector.multi_reduction <add>, %62, %cst_5 [2] : vector<16x8x8xf32> to vector<16x8xf32>
    %64 = vector.shape_cast %63 : vector<16x8xf32> to vector<16x8x1xf32>
    %65 = vector.broadcast %64 : vector<16x8x1xf32> to vector<16x8x8xf32>
    %66 = arith.divf %62, %65 : vector<16x8x8xf32>
    "tpu.trace_start"() <{level = 10 : i32, message = "gij,gjd->gid"}> : () -> ()
    %cst_6 = arith.constant dense<0.000000e+00> : vector<16x8x16xf32>
    %67 = tpu.matmul %66, %56, %cst_6 {dimension_numbers = #tpu.dot_dimension_numbers<[2], [1], [1], [2], [0, 0, 0, 1, 1, 2], [0], [0]>} : vector<16x8x8xf32>, vector<16x8x16xf32>, vector<16x8x16xf32> -> vector<16x8x16xf32>
    "tpu.trace_stop"() : () -> ()
    %68 = vector.extract_strided_slice %67 {offsets = [0, 0, 0], sizes = [2, 8, 16], strides = [1, 1, 1]} : vector<16x8x16xf32> to vector<2x8x16xf32>
    %69 = vector.shape_cast %68 : vector<2x8x16xf32> to vector<16x16xf32>
    %c0_7 = arith.constant 0 : index
    %c0_8 = arith.constant 0 : index
    %70 = vector.load %arg5[%c0_7, %c0_8] : memref<16x128xf32, #tpu.memory_space<vmem>>, vector<16x16xf32>
    tpu.vector_store %arg5[%c0_7, %c0_8], %69 {strides = array<i32>} : memref<16x128xf32, #tpu.memory_space<vmem>>, vector<16x16xf32>,
    %71 = vector.extract_strided_slice %67 {offsets = [2, 0, 0], sizes = [2, 8, 16], strides = [1, 1, 1]} : vector<16x8x16xf32> to vector<2x8x16xf32>
    %72 = vector.shape_cast %71 : vector<2x8x16xf32> to vector<16x16xf32>
    %c0_9 = arith.constant 0 : index
    %c16 = arith.constant 16 : index
    %73 = vector.load %arg5[%c0_9, %c16] : memref<16x128xf32, #tpu.memory_space<vmem>>, vector<16x16xf32>
    tpu.vector_store %arg5[%c0_9, %c16], %72 {strides = array<i32>} : memref<16x128xf32, #tpu.memory_space<vmem>>, vector<16x16xf32>,
    %74 = vector.extract_strided_slice %67 {offsets = [4, 0, 0], sizes = [2, 8, 16], strides = [1, 1, 1]} : vector<16x8x16xf32> to vector<2x8x16xf32>
    %75 = vector.shape_cast %74 : vector<2x8x16xf32> to vector<16x16xf32>
    %c0_10 = arith.constant 0 : index
    %c32 = arith.constant 32 : index
    %76 = vector.load %arg5[%c0_10, %c32] : memref<16x128xf32, #tpu.memory_space<vmem>>, vector<16x16xf32>
    tpu.vector_store %arg5[%c0_10, %c32], %75 {strides = array<i32>} : memref<16x128xf32, #tpu.memory_space<vmem>>, vector<16x16xf32>,
    %77 = vector.extract_strided_slice %67 {offsets = [6, 0, 0], sizes = [2, 8, 16], strides = [1, 1, 1]} : vector<16x8x16xf32> to vector<2x8x16xf32>
    %78 = vector.shape_cast %77 : vector<2x8x16xf32> to vector<16x16xf32>
    %c0_11 = arith.constant 0 : index
    %c48 = arith.constant 48 : index
    %79 = vector.load %arg5[%c0_11, %c48] : memref<16x128xf32, #tpu.memory_space<vmem>>, vector<16x16xf32>
    tpu.vector_store %arg5[%c0_11, %c48], %78 {strides = array<i32>} : memref<16x128xf32, #tpu.memory_space<vmem>>, vector<16x16xf32>,
    %80 = vector.extract_strided_slice %67 {offsets = [8, 0, 0], sizes = [2, 8, 16], strides = [1, 1, 1]} : vector<16x8x16xf32> to vector<2x8x16xf32>
    %81 = vector.shape_cast %80 : vector<2x8x16xf32> to vector<16x16xf32>
    %c0_12 = arith.constant 0 : index
    %c64 = arith.constant 64 : index
    %82 = vector.load %arg5[%c0_12, %c64] : memref<16x128xf32, #tpu.memory_space<vmem>>, vector<16x16xf32>
    tpu.vector_store %arg5[%c0_12, %c64], %81 {strides = array<i32>} : memref<16x128xf32, #tpu.memory_space<vmem>>, vector<16x16xf32>,
    %83 = vector.extract_strided_slice %67 {offsets = [10, 0, 0], sizes = [2, 8, 16], strides = [1, 1, 1]} : vector<16x8x16xf32> to vector<2x8x16xf32>
    %84 = vector.shape_cast %83 : vector<2x8x16xf32> to vector<16x16xf32>
    %c0_13 = arith.constant 0 : index
    %c80 = arith.constant 80 : index
    %85 = vector.load %arg5[%c0_13, %c80] : memref<16x128xf32, #tpu.memory_space<vmem>>, vector<16x16xf32>
    tpu.vector_store %arg5[%c0_13, %c80], %84 {strides = array<i32>} : memref<16x128xf32, #tpu.memory_space<vmem>>, vector<16x16xf32>,
    %86 = vector.extract_strided_slice %67 {offsets = [12, 0, 0], sizes = [2, 8, 16], strides = [1, 1, 1]} : vector<16x8x16xf32> to vector<2x8x16xf32>
    %87 = vector.shape_cast %86 : vector<2x8x16xf32> to vector<16x16xf32>
    %c0_14 = arith.constant 0 : index
    %c96 = arith.constant 96 : index
    %88 = vector.load %arg5[%c0_14, %c96] : memref<16x128xf32, #tpu.memory_space<vmem>>, vector<16x16xf32>
    tpu.vector_store %arg5[%c0_14, %c96], %87 {strides = array<i32>} : memref<16x128xf32, #tpu.memory_space<vmem>>, vector<16x16xf32>,
    %89 = vector.extract_strided_slice %67 {offsets = [14, 0, 0], sizes = [2, 8, 16], strides = [1, 1, 1]} : vector<16x8x16xf32> to vector<2x8x16xf32>
    %90 = vector.shape_cast %89 : vector<2x8x16xf32> to vector<16x16xf32>
    %c0_15 = arith.constant 0 : index
    %c112 = arith.constant 112 : index
    %91 = vector.load %arg5[%c0_15, %c112] : memref<16x128xf32, #tpu.memory_space<vmem>>, vector<16x16xf32>
    tpu.vector_store %arg5[%c0_15, %c112], %90 {strides = array<i32>} : memref<16x128xf32, #tpu.memory_space<vmem>>, vector<16x16xf32>,
    %c0_16 = arith.constant 0 : index
    %c0_17 = arith.constant 0 : index
    %92 = vector.load %arg5[%c0_16, %c0_17] : memref<16x128xf32, #tpu.memory_space<vmem>>, vector<16x128xf32>
    %c0_18 = arith.constant 0 : index
    %c0_19 = arith.constant 0 : index
    %93 = vector.load %arg2[%c0_18, %c0_19] : memref<128x32xf32, #tpu.memory_space<vmem>>, vector<128x32xf32>
    %cst_20 = arith.constant dense<0.000000e+00> : vector<16x32xf32>
    %94 = tpu.matmul %92, %93, %cst_20 {dimension_numbers = #tpu.dot_dimension_numbers<[1], [0], [0], [1], [0, 0, 1, 1], [], []>} : vector<16x128xf32>, vector<128x32xf32>, vector<16x32xf32> -> vector<16x32xf32>
    %c0_21 = arith.constant 0 : index
    %c0_22 = arith.constant 0 : index
    %95 = vector.load %arg3[%c0_21, %c0_22] : memref<1x32xf32, #tpu.memory_space<vmem>>, vector<1x32xf32>
    %96 = vector.broadcast %95 : vector<1x32xf32> to vector<16x32xf32>
    %97 = arith.addf %94, %96 : vector<16x32xf32>
    %c0_23 = arith.constant 0 : index
    %c0_24 = arith.constant 0 : index
    %98 = vector.load %arg4[%c0_23, %c0_24] : memref<16x32xf32, #tpu.memory_space<vmem>>, vector<16x32xf32>
    tpu.vector_store %arg4[%c0_23, %c0_24], %97 {strides = array<i32>} : memref<16x32xf32, #tpu.memory_space<vmem>>, vector<16x32xf32>,
    return
  }
}

</mosaic_0001>

<bundles_post_ra>
// kernel: attention_forward.1
= control target key start
LH: loop header
LB: loop body
LE: loop exit
PB: predicated region body
PF: predicated region fallthrough
CT: control target
= control target key end

     0   :  { %v3517_v7 = vmov 0.0   ;;  %s4085_s0 = inlined_call_operand.vmem [shape: f32[16,32], index: 0, kind: input, shape index: {}]   ;;  %s4086_s1 = inlined_call_operand.vmem [shape: f32[32,384], index: 1, kind: input, shape index: {}]   ;;  %s4087_s2 = inlined_call_operand.vmem [shape: f32[128,32], index: 2, kind: input, shape index: {}]   ;;  %s4088_s3 = inlined_call_operand.vmem [shape: f32[1,32], index: 3, kind: input, shape index: {}]   ;;  %s4089_s4 = inlined_call_operand.hbm [shape: f32[16,32], index: 4, kind: output, shape index: {}]  }
   0x1   :  { %v21_v0 = vld [vmem:[%s4086_s1 + $0x8] sm:$0xff]  ;;  %v24_v1 = vld [vmem:[%s4086_s1 + $0x20] sm:$0xff]  ;;  %v23_v4 = vld [vmem:[%s4086_s1 + $0x18] sm:$0xff]  ;;  %103 = vmatprep.mubr.f32.mxu0 %v3517_v7  ;;  %3194 = vmatprep.subr.mxu1 %v3517_v7 }
   0x2   :  { %v20_v2 = vld [vmem:[%s4086_s1] sm:$0xff]  ;;  %v3369_v3 = vpack.c.bf16 %v24_v1, %v21_v0  ;;  %v27_v5 = vld [vmem:[%s4086_s1 + $0x38] sm:$0xff]  ;;  %v30_v6 = vld [vmem:[%s4086_s1 + $0x50] sm:$0xff] }
   0x3   :  { %v3371_v8 = vpack.c.bf16 %v23_v4, %v20_v2  ;;  %v3373_v9 = vpack.c.bf16 %v30_v6, %v27_v5  ;;  %v26_v10 = vld [vmem:[%s4086_s1 + $0x30] sm:$0xff]  ;;  %v29_v11 = vld [vmem:[%s4086_s1 + $0x48] sm:$0xff] }
   0x4   :  { %3370 = vmatprep.subr.bf16.mxu0 %v3369_v3  ;;  %v22_v12 = vld [vmem:[%s4086_s1 + $0x10] sm:$0xff]  ;;  %v25_v13 = vld [vmem:[%s4086_s1 + $0x28] sm:$0xff]  ;;  %v3375_v14 = vpack.c.bf16 %v29_v11, %v26_v10 }
   0x5   :  { %3372 = vmatpush1.bf16.msra.mxu0 %v3371_v8 }
   0x6   :  { %9 = vsyncpa [#allocation4], 0  ;;  %3374 = vmatprep.subr.bf16.mxu0 %v3373_v9  ;;  %v3377_v15 = vpack.c.bf16 %v25_v13, %v22_v12  ;;  %v28_v16 = vld [vmem:[%s4086_s1 + $0x40] sm:$0xff]  ;;  %v31_v17 = vld [vmem:[%s4086_s1 + $0x58] sm:$0xff]  ;;  %vm32_vm0 = vcmask 261120   ;;  %vm3518_vm1 = vmmov 0  }
   0x7   :  { %v18_v18 = vld [vmem:[%s4085_s0] sm:$0xff]  ;;  %v3381_v19 = vpack.c.bf16 %v31_v17, %v28_v16  ;;  %v19_v20 = vld [vmem:[%s4085_s0 + $0x8] sm:$0xff]  ;;  %3196 = vmatprep.mubr.msk.f32.mxu1 %vm3518_vm1, %v3517_v7  ;;  %vm295_vm2 = vcmask 130048   ;;  %s3519_s0 = smov 112   ;;  %s3520_s1 = smov 96   ;;  %vm1480_vm3 = vcmask 64512  }
   0x8   :  { %s3521_s17 = smov 80   ;;  %s3522_s18 = smov 64   ;;  %vm2835_vm4 = vcmask 261248   ;;  %vm2846_vm5 = vcmask 392448   ;;  %vm2857_vm6 = vcmask 523648   ;;  %vm2868_vm7 = vcmask 654848  }
   0x9   :  { %3376 = vmatpush1.bf16.msra.mxu0 %v3375_v14  ;;  %s3523_s19 = smov 48   ;;  %s3524_s20 = smov 32   ;;  %vm2879_vm8 = vcmask 786048   ;;  %vm2890_vm9 = vcmask 917248   ;;  %vm2901_vm10 = vcmask 1048448  }
   0xa   :  { %3378 = vmatprep.subr.bf16.mxu0 %v3377_v15  ;;  %s3525_s21 = smov 16  }
   0xc   :  { %3022 = vmatmul.mubr.msk.f32.vlgmr.msra.gmra.mrb[0].mxu0 %vm32_vm0, %v18_v18 }
   0xd   :  { %109 = vmatprep.mubr.f32.mxu0 %v3517_v7  ;;  %3380 = vmatpush3.bf16.msra.mxu0 %v3377_v15 }
   0xe   :  { %3382 = vmatprep.subr.bf16.mxu0 %v3381_v19 }
  0x10   :  { %3023 = vmatmul.mubr.msk.f32.gmra.mrb[2].mxu0 %vm32_vm0, %v19_v20 }
  0x11   :  { %3384 = vmatpush3.bf16.msra.mxu0 %v3381_v19  ;;  %3171 = vmatprep.mubr.msk.f32.mxu0 %vm32_vm0, %v18_v18 }
  0x12   :  { %3174 = vmatprep.subr.mxu0 %v3517_v7 }
  0x14   :  { %3172 = vmatmul.mubr.msk.f32.vlgmr.msra.gmra.mrb[4].mxu0 %vm32_vm0, %v19_v20 }
  0x15   :  { %3176 = vmatprep.mubr.msk.f32.mxu0 %vm3518_vm1, %v3517_v7 }
  0xdf   :  { %v105_v21 = vpop.f32.mrb[0].mxu0 }
  0xe0   :  { %193 = vrot.lane.b32.xlu0 %v105_v21, %s3519_s0  ;;  %v107_v22 = vpop.f32.mrb[1].mxu0 }
  0xe1   :  { %3175 = vmatpush3.xpose.msk.msra.mxu0 %vm295_vm2, %v107_v22 }
  0xe2   :  { %3179 = vmatprep.subr.mxu0 %v3517_v7 }
  0xe3   :  { %v111_v23 = vpop.f32.mrb[2].mxu0 }
  0xe4   :  { %197 = vrot.lane.b32.xlu0 %v105_v21, %s3520_s1  ;;  %3177 = vmatmul.mubr.msk.f32.vlgmr.msra.gmra.mrb[6].mxu0 %vm295_vm2, %v105_v21  ;;  %v113_v24 = vpop.f32.mrb[3].mxu0 }
  0xe5   :  { %195 = vrot.lane.b32.xlu1 %v111_v23, %s3519_s0  ;;  %3180 = vmatpush3.xpose.msk.msra.mxu0 %vm295_vm2, %v113_v24 }
  0xe6   :  { %3181 = vmatprep.mubr.msk.f32.mxu0 %vm3518_vm1, %v3517_v7  ;;  %3184 = vmatprep.subr.mxu0 %v3517_v7 }
  0xe7   :  { %v3638_v25 = vpop.f32.mrb[4].mxu0 }
  0xe8   :  { %201 = vrot.lane.b32.xlu0 %v105_v21, %s3521_s17  ;;  %3182 = vmatmul.mubr.msk.f32.vlgmr.msra.gmra.mrb[8].mxu0 %vm295_vm2, %v111_v23  ;;  %v3642_v26 = vpop.f32.mrb[5].mxu0 }
  0xe9   :  { %199 = vrot.lane.b32.xlu1 %v111_v23, %s3520_s1  ;;  %3186 = vmatprep.mubr.msk.f32.mxu0 %vm3518_vm1, %v3517_v7 }
  0xec   :  { %205 = vrot.lane.b32.xlu0 %v105_v21, %s3522_s18 }
  0xed   :  { %203 = vrot.lane.b32.xlu1 %v111_v23, %s3521_s17 }
  0xf0   :  { %209 = vrot.lane.b32.xlu0 %v105_v21, %s3523_s19 }
  0xf1   :  { %207 = vrot.lane.b32.xlu1 %v111_v23, %s3522_s18 }
  0xf4   :  { %223 = vrot.lane.b32.xlu0 %v107_v22, %s3519_s0 }
  0xf5   :  { %211 = vrot.lane.b32.xlu1 %v111_v23, %s3523_s19 }
  0xf8   :  { %213 = vrot.lane.b32.xlu0 %v105_v21, %s3524_s20 }
  0xf9   :  { %215 = vrot.lane.b32.xlu1 %v111_v23, %s3524_s20 }
  0xfc   :  { %227 = vrot.lane.b32.xlu0 %v107_v22, %s3520_s1 }
  0xfd   :  { %225 = vrot.lane.b32.xlu1 %v113_v24, %s3519_s0 }
 0x100   :  { %231 = vrot.lane.b32.xlu0 %v107_v22, %s3521_s17 }
 0x101   :  { %229 = vrot.lane.b32.xlu1 %v113_v24, %s3520_s1 }
 0x104   :  { %235 = vrot.lane.b32.xlu0 %v107_v22, %s3522_s18 }
 0x105   :  { %233 = vrot.lane.b32.xlu1 %v113_v24, %s3521_s17 }
 0x108   :  { %239 = vrot.lane.b32.xlu0 %v107_v22, %s3523_s19 }
 0x109   :  { %237 = vrot.lane.b32.xlu1 %v113_v24, %s3522_s18 }
 0x10c   :  { %243 = vrot.lane.b32.xlu0 %v107_v22, %s3524_s20 }
 0x10d   :  { %241 = vrot.lane.b32.xlu1 %v113_v24, %s3523_s19 }
 0x110   :  { %247 = vrot.lane.b32.xlu0 %v107_v22, %s3525_s21 }
 0x111   :  { %245 = vrot.lane.b32.xlu1 %v113_v24, %s3524_s20 }
 0x114   :  { %217 = vrot.lane.b32.xlu0 %v105_v21, %s3525_s21 }
 0x115   :  { %249 = vrot.lane.b32.xlu1 %v113_v24, %s3525_s21 }
 0x118   :  { %255 = vrot.lane.b32.xlu0 %v3638_v25, %s3519_s0 }
 0x119   :  { %219 = vrot.lane.b32.xlu1 %v111_v23, %s3525_s21 }
 0x11c   :  { %265 = vrot.lane.b32.xlu0 %v3642_v26, %s3521_s17 }
 0x11d   :  { %261 = vrot.lane.b32.xlu1 %v3638_v25, %s3520_s1 }
 0x120   :  { %271 = vrot.lane.b32.xlu0 %v3642_v26, %s3522_s18 }
 0x121   :  { %267 = vrot.lane.b32.xlu1 %v3638_v25, %s3521_s17 }
 0x125   :  { %273 = vrot.lane.b32.xlu1 %v3638_v25, %s3522_s18 }
 0x129   :  { %253 = vrot.lane.b32.xlu1 %v3642_v26, %s3519_s0 }
 0x12d   :  { %259 = vrot.lane.b32.xlu1 %v3642_v26, %s3520_s1 }
 0x152   :  { %v194_v27 = vpop.permute.xlu0 %193 }
 0x156   :  { %v198_v28 = vpop.permute.xlu0 %197 }
 0x157   :  { %v196_v29 = vpop.permute.xlu1 %195 }
 0x15a   :  { %v202_v30 = vpop.permute.xlu0 %201 }
 0x15b   :  { %v200_v31 = vpop.permute.xlu1 %199 }
 0x15e   :  { %v206_v32 = vpop.permute.xlu0 %205 }
 0x15f   :  { %v204_v33 = vpop.permute.xlu1 %203 }
 0x162   :  { %v210_v34 = vpop.permute.xlu0 %209 }
 0x163   :  { %v208_v35 = vpop.permute.xlu1 %207 }
 0x166   :  { %v224_v36 = vpop.permute.xlu0 %223 }
 0x167   :  { %v212_v37 = vpop.permute.xlu1 %211  ;;  %3185 = vmatpush3.xpose.msk.msra.mxu0 %vm295_vm2, %v224_v36 }
 0x168   :  { %3189 = vmatprep.subr.mxu0 %v3517_v7 }
 0x16a   :  { %v214_v38 = vpop.permute.xlu0 %213  ;;  %3187 = vmatmul.mubr.msk.f32.vlgmr.msra.gmra.mrb[10].mxu0 %vm295_vm2, %v194_v27 }
 0x16b   :  { %v216_v39 = vpop.permute.xlu1 %215  ;;  %3191 = vmatprep.mubr.msk.f32.mxu0 %vm3518_vm1, %v3517_v7 }
 0x16e   :  { %v228_v40 = vpop.permute.xlu0 %227 }
 0x16f   :  { %v226_v41 = vpop.permute.xlu1 %225  ;;  %3195 = vmatpush3.xpose.msk.msra.mxu1 %vm295_vm2, %v228_v40 }
 0x170   :  { %3190 = vmatpush3.xpose.msk.msra.mxu0 %vm295_vm2, %v226_v41  ;;  %3204 = vmatprep.subr.mxu1 %v3517_v7 }
 0x171   :  { %3199 = vmatprep.subr.mxu0 %v3517_v7 }
 0x172   :  { %3197 = vmatmul.mubr.msk.f32.vlgmr.msra.gmra.mrb[0].mxu1 %vm295_vm2, %v198_v28  ;;  %v232_v42 = vpop.permute.xlu0 %231 }
 0x173   :  { %v230_v43 = vpop.permute.xlu1 %229  ;;  %3192 = vmatmul.mubr.msk.f32.vlgmr.msra.gmra.mrb[12].mxu0 %vm295_vm2, %v196_v29  ;;  %3205 = vmatpush3.xpose.msk.msra.mxu1 %vm295_vm2, %v232_v42 }
 0x174   :  { %3200 = vmatpush3.xpose.msk.msra.mxu0 %vm295_vm2, %v230_v43  ;;  %3201 = vmatprep.mubr.msk.f32.mxu0 %vm3518_vm1, %v3517_v7 }
 0x175   :  { %3206 = vmatprep.mubr.msk.f32.mxu1 %vm3518_vm1, %v3517_v7  ;;  %3214 = vmatprep.subr.mxu1 %v3517_v7 }
 0x176   :  { %3207 = vmatmul.mubr.msk.f32.vlgmr.msra.gmra.mrb[2].mxu1 %vm295_vm2, %v202_v30  ;;  %v236_v44 = vpop.permute.xlu0 %235  ;;  %3209 = vmatprep.subr.mxu0 %v3517_v7 }
 0x177   :  { %v234_v45 = vpop.permute.xlu1 %233  ;;  %3202 = vmatmul.mubr.msk.f32.vlgmr.msra.gmra.mrb[14].mxu0 %vm295_vm2, %v200_v31  ;;  %3215 = vmatpush3.xpose.msk.msra.mxu1 %vm295_vm2, %v236_v44 }
 0x178   :  { %3210 = vmatpush3.xpose.msk.msra.mxu0 %vm295_vm2, %v234_v45  ;;  %3211 = vmatprep.mubr.msk.f32.mxu0 %vm3518_vm1, %v3517_v7 }
 0x179   :  { %3216 = vmatprep.mubr.msk.f32.mxu1 %vm3518_vm1, %v3517_v7  ;;  %3224 = vmatprep.subr.mxu1 %v3517_v7 }
 0x17a   :  { %3217 = vmatmul.mubr.msk.f32.vlgmr.msra.gmra.mrb[4].mxu1 %vm295_vm2, %v206_v32  ;;  %v240_v46 = vpop.permute.xlu0 %239  ;;  %3219 = vmatprep.subr.mxu0 %v3517_v7 }
 0x17b   :  { %v238_v47 = vpop.permute.xlu1 %237  ;;  %3212 = vmatmul.mubr.msk.f32.vlgmr.msra.gmra.mrb[16].mxu0 %vm295_vm2, %v204_v33  ;;  %3225 = vmatpush3.xpose.msk.msra.mxu1 %vm295_vm2, %v240_v46 }
 0x17c   :  { %3220 = vmatpush3.xpose.msk.msra.mxu0 %vm295_vm2, %v238_v47  ;;  %3221 = vmatprep.mubr.msk.f32.mxu0 %vm3518_vm1, %v3517_v7 }
 0x17d   :  { %3226 = vmatprep.mubr.msk.f32.mxu1 %vm3518_vm1, %v3517_v7  ;;  %3234 = vmatprep.subr.mxu1 %v3517_v7 }
 0x17e   :  { %3227 = vmatmul.mubr.msk.f32.vlgmr.msra.gmra.mrb[6].mxu1 %vm295_vm2, %v210_v34  ;;  %v244_v48 = vpop.permute.xlu0 %243  ;;  %3229 = vmatprep.subr.mxu0 %v3517_v7 }
 0x17f   :  { %v242_v49 = vpop.permute.xlu1 %241  ;;  %3222 = vmatmul.mubr.msk.f32.vlgmr.msra.gmra.mrb[18].mxu0 %vm295_vm2, %v208_v35  ;;  %3235 = vmatpush3.xpose.msk.msra.mxu1 %vm295_vm2, %v244_v48 }
 0x180   :  { %3230 = vmatpush3.xpose.msk.msra.mxu0 %vm295_vm2, %v242_v49  ;;  %3231 = vmatprep.mubr.msk.f32.mxu0 %vm3518_vm1, %v3517_v7 }
 0x181   :  { %3236 = vmatprep.mubr.msk.f32.mxu1 %vm3518_vm1, %v3517_v7  ;;  %3244 = vmatprep.subr.mxu1 %v3517_v7 }
 0x182   :  { %3237 = vmatmul.mubr.msk.f32.vlgmr.msra.gmra.mrb[8].mxu1 %vm295_vm2, %v214_v38  ;;  %v248_v50 = vpop.permute.xlu0 %247  ;;  %3239 = vmatprep.subr.mxu0 %v3517_v7 }
 0x183   :  { %v246_v51 = vpop.permute.xlu1 %245  ;;  %3232 = vmatmul.mubr.msk.f32.vlgmr.msra.gmra.mrb[20].mxu0 %vm295_vm2, %v212_v37  ;;  %3245 = vmatpush3.xpose.msk.msra.mxu1 %vm295_vm2, %v248_v50 }
 0x184   :  { %3240 = vmatpush3.xpose.msk.msra.mxu0 %vm295_vm2, %v246_v51  ;;  %3241 = vmatprep.mubr.msk.f32.mxu0 %vm3518_vm1, %v3517_v7 }
 0x185   :  { %3246 = vmatprep.mubr.msk.f32.mxu1 %vm3518_vm1, %v3517_v7  ;;  %3249 = vmatprep.subr.mxu0 %v3517_v7 }
 0x186   :  { %v218_v52 = vpop.permute.xlu0 %217  ;;  %3254 = vmatprep.subr.mxu1 %v3517_v7 }
 0x187   :  { %v250_v53 = vpop.permute.xlu1 %249  ;;  %3242 = vmatmul.mubr.msk.f32.vlgmr.msra.gmra.mrb[22].mxu0 %vm295_vm2, %v216_v39  ;;  %3247 = vmatmul.mubr.msk.f32.vlgmr.msra.gmra.mrb[10].mxu1 %vm295_vm2, %v218_v52 }
 0x188   :  { %3250 = vmatpush3.xpose.msk.msra.mxu0 %vm295_vm2, %v250_v53  ;;  %3251 = vmatprep.mubr.msk.f32.mxu0 %vm3518_vm1, %v3517_v7 }
 0x189   :  { %3259 = vmatprep.subr.mxu0 %v3517_v7  ;;  %3255 = vmatpush3.msra.mxu1 %v3642_v26 }
 0x18a   :  { %3256 = vmatprep.mubr.msk.f32.mxu1 %vm3518_vm1, %v3517_v7  ;;  %3264 = vmatprep.subr.mxu1 %v3517_v7  ;;  %v3808_v44 = vpop.permute.xlu0 %255 }
 0x18b   :  { %v220_v54 = vpop.permute.xlu1 %219 }
 0x18c   :  { %3252 = vmatmul.mubr.msk.f32.vlgmr.msra.gmra.mrb[24].mxu0 %vm295_vm2, %v220_v54 }
 0x18d   :  { %3260 = vmatpush3.msra.mxu0 %v3638_v25  ;;  %3261 = vmatprep.mubr.msk.f32.mxu0 %vm3518_vm1, %v3517_v7 }
 0x18e   :  { %3269 = vmatprep.subr.mxu0 %v3517_v7  ;;  %v3814_v46 = vpop.permute.xlu0 %265 }
 0x18f   :  { %v3804_v42 = vpop.permute.xlu1 %261 }
 0x192   :  { %v3820_v48 = vpop.permute.xlu0 %271 }
 0x193   :  { %v3806_v43 = vpop.permute.xlu1 %267 }
 0x197   :  { %v3812_v45 = vpop.permute.xlu1 %273 }
 0x19b   :  { %v3818_v47 = vpop.permute.xlu1 %253 }
 0x19f   :  { %v3824_v49 = vpop.permute.xlu1 %259 }
 0x1b7   :  { %v3740_v55 = vpop.f32.mrb[6].mxu0 }
 0x1b8   :  { %v3178_v56 = vpop.f32.mrb[7].mxu0  ;;  %v1481_v57 = vsel %vm1480_vm3, %v3740_v55, -inf }
 0x1b9   :  { %1482 = vmax.xlane.f32.xlu0 %v1481_v57 }
 0x1bb   :  { %v3744_v58 = vpop.f32.mrb[8].mxu0 }
 0x1bc   :  { %v3183_v59 = vpop.f32.mrb[9].mxu0  ;;  %v1484_v60 = vsel %vm1480_vm3, %v3744_v58, -inf }
 0x1bd   :  { %1485 = vmax.xlane.f32.xlu1 %v1484_v60 }
 0x23d   :  { %v3748_v61 = vpop.f32.mrb[10].mxu0 }
 0x23e   :  { %v3188_v62 = vpop.f32.mrb[11].mxu0  ;;  %v1487_v63 = vsel %vm1480_vm3, %v3748_v61, -inf }
 0x23f   :  { %1488 = vmax.xlane.f32.xlu0 %v1487_v63 }
 0x245   :  { %v3752_v0 = vpop.f32.mrb[0].mxu1 }
 0x246   :  { %v3754_v1 = vpop.f32.mrb[12].mxu0  ;;  %v3198_v2 = vpop.f32.mrb[1].mxu1  ;;  %v1493_v3 = vsel %vm1480_vm3, %v3752_v0, -inf }
 0x247   :  { %v3193_v4 = vpop.f32.mrb[13].mxu0  ;;  %1494 = vmax.xlane.f32.xlu1 %v1493_v3  ;;  %v1490_v5 = vsel %vm1480_vm3, %v3754_v1, -inf  ;;  %v1483_v50 = vpop.xlane.xlu0 %1482 }
 0x248   :  { %1491 = vmax.xlane.f32.xlu0 %v1490_v5  ;;  %v1529_v51 = vsub.f32 %v3740_v55, %v1483_v50 }
 0x249   :  { %v3760_v6 = vpop.f32.mrb[2].mxu1 }
 0x24a   :  { %v3762_v8 = vpop.f32.mrb[14].mxu0  ;;  %v3208_v9 = vpop.f32.mrb[3].mxu1  ;;  %v1499_v10 = vsel %vm1480_vm3, %v3760_v6, -inf  ;;  %v1545_v53 = vmul.f32 1.442695, %v1529_v51 }
 0x24b   :  { %v3203_v11 = vpop.f32.mrb[15].mxu0  ;;  %1500 = vmax.xlane.f32.xlu1 %v1499_v10  ;;  %v1496_v12 = vsel %vm1480_vm3, %v3762_v8, -inf  ;;  %v1486_v52 = vpop.xlane.xlu1 %1485 }
 0x24c   :  { %1497 = vmax.xlane.f32.xlu0 %v1496_v12  ;;  %v1530_v54 = vsub.f32 %v3744_v58, %v1486_v52  ;;  %3429 = vpow2.f32 %v1545_v53 }
 0x24d   :  { %v3768_v13 = vpop.f32.mrb[4].mxu1 }
 0x24e   :  { %v3770_v14 = vpop.f32.mrb[16].mxu0  ;;  %v3218_v15 = vpop.f32.mrb[5].mxu1  ;;  %v1505_v16 = vsel %vm1480_vm3, %v3768_v13, -inf  ;;  %v1547_v56 = vmul.f32 1.442695, %v1530_v54 }
 0x24f   :  { %v3213_v17 = vpop.f32.mrb[17].mxu0  ;;  %1506 = vmax.xlane.f32.xlu1 %v1505_v16  ;;  %v1502_v18 = vsel %vm1480_vm3, %v3770_v14, -inf }
 0x250   :  { %1503 = vmax.xlane.f32.xlu0 %v1502_v18  ;;  %3431 = vpow2.f32 %v1547_v56 }
 0x251   :  { %v3776_v19 = vpop.f32.mrb[6].mxu1 }
 0x252   :  { %v3778_v20 = vpop.f32.mrb[18].mxu0  ;;  %v3228_v21 = vpop.f32.mrb[7].mxu1  ;;  %v1511_v22 = vsel %vm1480_vm3, %v3776_v19, -inf }
 0x253   :  { %v3223_v23 = vpop.f32.mrb[19].mxu0  ;;  %1512 = vmax.xlane.f32.xlu1 %v1511_v22  ;;  %v1508_v24 = vsel %vm1480_vm3, %v3778_v20, -inf }
 0x254   :  { %1509 = vmax.xlane.f32.xlu0 %v1508_v24 }
 0x255   :  { %v3784_v27 = vpop.f32.mrb[8].mxu1 }
 0x256   :  { %v3786_v28 = vpop.f32.mrb[20].mxu0  ;;  %v3238_v29 = vpop.f32.mrb[9].mxu1  ;;  %v1517_v30 = vsel %vm1480_vm3, %v3784_v27, -inf }
 0x257   :  { %v3233_v31 = vpop.f32.mrb[21].mxu0  ;;  %1518 = vmax.xlane.f32.xlu1 %v1517_v30  ;;  %v1514_v32 = vsel %vm1480_vm3, %v3786_v28, -inf  ;;  %v3830_v57 = vpop.eup %3429 }
 0x258   :  { %1515 = vmax.xlane.f32.xlu0 %v1514_v32  ;;  %v1577_v59 = vsel %vm1480_vm3, %v3830_v57, 0.0 }
 0x25a   :  { %v3792_v33 = vpop.f32.mrb[22].mxu0  ;;  %v3794_v34 = vpop.f32.mrb[10].mxu1 }
 0x25b   :  { %v3243_v35 = vpop.f32.mrb[23].mxu0  ;;  %v3248_v36 = vpop.f32.mrb[11].mxu1  ;;  %v1520_v37 = vsel %vm1480_vm3, %v3792_v33, -inf  ;;  %v1523_v38 = vsel %vm1480_vm3, %v3794_v34, -inf }
 0x25c   :  { %1521 = vmax.xlane.f32.xlu0 %v1520_v37  ;;  %1524 = vmax.xlane.f32.xlu1 %v1523_v38  ;;  %v3834_v60 = vpop.eup %3431 }
 0x25d   :  { %v1580_v62 = vsel %vm1480_vm3, %v3834_v60, 0.0 }
 0x25f   :  { %v3800_v39 = vpop.f32.mrb[24].mxu0 }
 0x260   :  { %v3253_v40 = vpop.f32.mrb[25].mxu0  ;;  %v1526_v41 = vsel %vm1480_vm3, %v3800_v39, -inf }
 0x261   :  { %1527 = vmax.xlane.f32.xlu0 %v1526_v41 }
 0x26d   :  { %279 = vrot.lane.b32.xlu1 %v3638_v25, %s3523_s19 }
 0x271   :  { %285 = vrot.lane.b32.xlu1 %v3638_v25, %s3524_s20 }
 0x277   :  { %277 = vrot.lane.b32.xlu0 %v3642_v26, %s3523_s19 }
 0x27b   :  { %283 = vrot.lane.b32.xlu0 %v3642_v26, %s3524_s20 }
 0x295   :  { %1578 = vadd.xlane.f32.xlu1 %v1577_v59 }
 0x29a   :  { %1581 = vadd.xlane.f32.xlu0 %v1580_v62 }
 0x2cc   :  { %v1489_v55 = vpop.xlane.xlu0 %1488 }
 0x2cd   :  { %v1531_v63 = vsub.f32 %v3748_v61, %v1489_v55 }
 0x2cf   :  { %v1549_v2 = vmul.f32 1.442695, %v1531_v63 }
 0x2d1   :  { %3433 = vpow2.f32 %v1549_v2 }
 0x2d4   :  { %v1495_v58 = vpop.xlane.xlu1 %1494 }
 0x2d5   :  { %v1533_v3 = vsub.f32 %v3752_v0, %v1495_v58  ;;  %v1492_v4 = vpop.xlane.xlu0 %1491 }
 0x2d6   :  { %v1532_v5 = vsub.f32 %v3754_v1, %v1492_v4 }
 0x2d7   :  { %v1553_v9 = vmul.f32 1.442695, %v1533_v3 }
 0x2d8   :  { %v1551_v10 = vmul.f32 1.442695, %v1532_v5  ;;  %v1501_v11 = vpop.xlane.xlu1 %1500 }
 0x2d9   :  { %3435 = vpow2.f32 %v1553_v9  ;;  %v1535_v12 = vsub.f32 %v3760_v6, %v1501_v11  ;;  %v1498_v15 = vpop.xlane.xlu0 %1497 }
 0x2da   :  { %3437 = vpow2.f32 %v1551_v10  ;;  %v1534_v16 = vsub.f32 %v3762_v8, %v1498_v15 }
 0x2db   :  { %v3843_v17 = vpop.eup %3433  ;;  %v1557_v61 = vmul.f32 1.442695, %v1535_v12 }
 0x2dc   :  { %v1555_v18 = vmul.f32 1.442695, %v1534_v16  ;;  %v1507_v21 = vpop.xlane.xlu1 %1506  ;;  %v1583_v0 = vsel %vm1480_vm3, %v3843_v17, 0.0 }
 0x2dd   :  { %3439 = vpow2.f32 %v1557_v61  ;;  %v1537_v1 = vsub.f32 %v3768_v13, %v1507_v21  ;;  %v1504_v22 = vpop.xlane.xlu0 %1503  ;;  %1584 = vadd.xlane.f32.xlu1 %v1583_v0 }
 0x2de   :  { %3441 = vpow2.f32 %v1555_v18  ;;  %v1536_v6 = vsub.f32 %v3770_v14, %v1504_v22 }
 0x2df   :  { %v1561_v23 = vmul.f32 1.442695, %v1537_v1 }
 0x2e0   :  { %v1559_v24 = vmul.f32 1.442695, %v1536_v6  ;;  %v1513_v29 = vpop.xlane.xlu1 %1512 }
 0x2e1   :  { %3443 = vpow2.f32 %v1561_v23  ;;  %v1539_v8 = vsub.f32 %v3776_v19, %v1513_v29  ;;  %v1510_v30 = vpop.xlane.xlu0 %1509 }
 0x2e2   :  { %3445 = vpow2.f32 %v1559_v24  ;;  %v1538_v31 = vsub.f32 %v3778_v20, %v1510_v30 }
 0x2e3   :  { %v3851_v32 = vpop.eup %3435  ;;  %v1565_v35 = vmul.f32 1.442695, %v1539_v8 }
 0x2e4   :  { %v3853_v36 = vpop.eup %3437  ;;  %v1563_v13 = vmul.f32 1.442695, %v1538_v31  ;;  %v1519_v37 = vpop.xlane.xlu1 %1518  ;;  %v1589_v14 = vsel %vm1480_vm3, %v3851_v32, 0.0 }
 0x2e5   :  { %3447 = vpow2.f32 %v1565_v35  ;;  %v1541_v38 = vsub.f32 %v3784_v27, %v1519_v37  ;;  %v1516_v40 = vpop.xlane.xlu0 %1515  ;;  %1590 = vadd.xlane.f32.xlu1 %v1589_v14  ;;  %v1586_v19 = vsel %vm1480_vm3, %v3853_v36, 0.0 }
 0x2e6   :  { %3449 = vpow2.f32 %v1563_v13  ;;  %v1540_v20 = vsub.f32 %v3786_v28, %v1516_v40  ;;  %1587 = vadd.xlane.f32.xlu0 %v1586_v19 }
 0x2e7   :  { %v3861_v41 = vpop.eup %3439  ;;  %v1569_v50 = vmul.f32 1.442695, %v1541_v38 }
 0x2e8   :  { %v3863_v51 = vpop.eup %3441  ;;  %v1567_v52 = vmul.f32 1.442695, %v1540_v20  ;;  %v1595_v53 = vsel %vm1480_vm3, %v3861_v41, 0.0 }
 0x2e9   :  { %3451 = vpow2.f32 %v1569_v50  ;;  %v1522_v27 = vpop.xlane.xlu0 %1521  ;;  %v1525_v54 = vpop.xlane.xlu1 %1524  ;;  %1596 = vadd.xlane.f32.xlu1 %v1595_v53  ;;  %v1592_v56 = vsel %vm1480_vm3, %v3863_v51, 0.0 }
 0x2ea   :  { %3453 = vpow2.f32 %v1567_v52  ;;  %v1542_v28 = vsub.f32 %v3792_v33, %v1522_v27  ;;  %v1543_v59 = vsub.f32 %v3794_v34, %v1525_v54  ;;  %1593 = vadd.xlane.f32.xlu0 %v1592_v56 }
 0x2eb   :  { %v3871_v62 = vpop.eup %3443 }
 0x2ec   :  { %v3873_v55 = vpop.eup %3445  ;;  %v1571_v63 = vmul.f32 1.442695, %v1542_v28  ;;  %v1573_v2 = vmul.f32 1.442695, %v1543_v59  ;;  %v1601_v58 = vsel %vm1480_vm3, %v3871_v62, 0.0 }
 0x2ed   :  { %1602 = vadd.xlane.f32.xlu1 %v1601_v58  ;;  %v1598_v3 = vsel %vm1480_vm3, %v3873_v55, 0.0  ;;  %v3912_v6 = vpop.permute.xlu1 %279 }
 0x2ee   :  { %3455 = vpow2.f32 %v1571_v63  ;;  %1599 = vadd.xlane.f32.xlu0 %v1598_v3  ;;  %v1528_v4 = vpop.xlane.xlu0 %1527 }
 0x2ef   :  { %v3879_v33 = vpop.eup %3447  ;;  %3457 = vpow2.f32 %v1573_v2  ;;  %v1544_v34 = vsub.f32 %v3800_v39, %v1528_v4 }
 0x2f0   :  { %v3882_v5 = vpop.eup %3449  ;;  %v1607_v9 = vsel %vm1480_vm3, %v3879_v33, 0.0 }
 0x2f1   :  { %v1575_v10 = vmul.f32 1.442695, %v1544_v34  ;;  %1608 = vadd.xlane.f32.xlu1 %v1607_v9  ;;  %v1604_v11 = vsel %vm1480_vm3, %v3882_v5, 0.0  ;;  %v3916_v24 = vpop.permute.xlu1 %285 }
 0x2f2   :  { %1605 = vadd.xlane.f32.xlu0 %v1604_v11  ;;  %v3914_v23 = vpop.permute.xlu0 %277 }
 0x2f3   :  { %v3888_v12 = vpop.eup %3451  ;;  %3459 = vpow2.f32 %v1575_v10 }
 0x2f4   :  { %v3890_v15 = vpop.eup %3453  ;;  %v1613_v16 = vsel %vm1480_vm3, %v3888_v12, 0.0 }
 0x2f5   :  { %1614 = vadd.xlane.f32.xlu1 %v1613_v16  ;;  %v1610_v39 = vsel %vm1480_vm3, %v3890_v15, 0.0 }
 0x2f6   :  { %1611 = vadd.xlane.f32.xlu0 %v1610_v39  ;;  %v3918_v8 = vpop.permute.xlu0 %283 }
 0x2f8   :  { %v3896_v61 = vpop.eup %3455 }
 0x2f9   :  { %v3898_v18 = vpop.eup %3457  ;;  %v1616_v21 = vsel %vm1480_vm3, %v3896_v61, 0.0 }
 0x2fa   :  { %1617 = vadd.xlane.f32.xlu0 %v1616_v21  ;;  %v1619_v0 = vsel %vm1480_vm3, %v3898_v18, 0.0 }
 0x2fb   :  { %1620 = vadd.xlane.f32.xlu1 %v1619_v0 }
 0x2fd   :  { %v3904_v1 = vpop.eup %3459 }
 0x2fe   :  { %v1622_v22 = vsel %vm1480_vm3, %v3904_v1, 0.0 }
 0x2ff   :  { %1623 = vadd.xlane.f32.xlu0 %v1622_v22  ;;  %v2909_v22 = vld [vmem:[%s4087_s2 + $0x18] sm:$0xff] }
 0x30c   :  { %291 = vrot.lane.b32.xlu1 %v3638_v25, %s3525_s21 }
 0x315   :  { %289 = vrot.lane.b32.xlu0 %v3642_v26, %s3525_s21 }
 0x322   :  { %v1579_v29 = vpop.xlane.xlu1 %1578 }
 0x323   :  { %3461 = vrcp.f32 %v1579_v29  ;;  %v2911_v29 = vld [vmem:[%s4087_s2 + $0x28] sm:$0xff] }
 0x327   :  { %v1582_v30 = vpop.xlane.xlu0 %1581 }
 0x328   :  { %3463 = vrcp.f32 %v1582_v30 }
 0x32d   :  { %v3462_v31 = vpop.eup %3461 }
 0x32e   :  { %v1626_v35 = vmul.f32 %v3462_v31, %v3830_v57  ;;  %v2912_v31 = vld [vmem:[%s4087_s2 + $0x30] sm:$0xff] }
 0x330   :  { %3257 = vmatmul.mubr.msk.f32.vlgmr.msra.gmra.mrb[12].mxu1 %vm1480_vm3, %v1626_v35  ;;  %v2913_v35 = vld [vmem:[%s4087_s2 + $0x38] sm:$0xff] }
 0x331   :  { %3265 = vmatpush3.msra.mxu1 %v3818_v47  ;;  %3266 = vmatprep.mubr.msk.f32.mxu1 %vm3518_vm1, %v3517_v7 }
 0x332   :  { %v3464_v25 = vpop.eup %3463  ;;  %3274 = vmatprep.subr.mxu1 %v3517_v7 }
 0x333   :  { %v1628_v26 = vmul.f32 %v3464_v25, %v3834_v60 }
 0x335   :  { %3262 = vmatmul.mubr.msk.f32.vlgmr.msra.gmra.mrb[26].mxu0 %vm1480_vm3, %v1628_v26 }
 0x336   :  { %3270 = vmatpush3.msra.mxu0 %v3808_v44  ;;  %3271 = vmatprep.mubr.msk.f32.mxu0 %vm3518_vm1, %v3517_v7 }
 0x337   :  { %3279 = vmatprep.subr.mxu0 %v3517_v7 }
 0x36a   :  { %v1585_v57 = vpop.xlane.xlu1 %1584 }
 0x36b   :  { %3465 = vrcp.f32 %v1585_v57  ;;  %v3397_v57 = vpack.c.bf16 %v2913_v35, %v2912_v31 }
 0x372   :  { %v1591_v47 = vpop.xlane.xlu1 %1590 }
 0x373   :  { %3467 = vrcp.f32 %v1591_v47  ;;  %v1588_v13 = vpop.xlane.xlu0 %1587 }
 0x374   :  { %3469 = vrcp.f32 %v1588_v13 }
 0x375   :  { %v3466_v37 = vpop.eup %3465 }
 0x376   :  { %v1630_v14 = vmul.f32 %v3466_v37, %v3843_v17  ;;  %v1597_v38 = vpop.xlane.xlu1 %1596  ;;  %v2914_v37 = vld [vmem:[%s4087_s2 + $0x40] sm:$0xff] }
 0x377   :  { %3471 = vrcp.f32 %v1597_v38  ;;  %v1594_v60 = vpop.xlane.xlu0 %1593 }
 0x378   :  { %3473 = vrcp.f32 %v1594_v60  ;;  %3267 = vmatmul.mubr.msk.f32.vlgmr.msra.gmra.mrb[14].mxu1 %vm1480_vm3, %v1630_v14  ;;  %v2915_v14 = vld [vmem:[%s4087_s2 + $0x48] sm:$0xff] }
 0x379   :  { %3275 = vmatpush3.msra.mxu1 %v3824_v49  ;;  %3276 = vmatprep.mubr.msk.f32.mxu1 %vm3518_vm1, %v3517_v7 }
 0x37a   :  { %v1603_v44 = vpop.xlane.xlu1 %1602  ;;  %3284 = vmatprep.subr.mxu1 %v3517_v7 }
 0x37b   :  { %3475 = vrcp.f32 %v1603_v44  ;;  %v1600_v40 = vpop.xlane.xlu0 %1599  ;;  %v3401_v44 = vpack.c.bf16 %v2915_v14, %v2914_v37 }
 0x37c   :  { %3477 = vrcp.f32 %v1600_v40 }
 0x37d   :  { %v3468_v19 = vpop.eup %3467 }
 0x37e   :  { %v3470_v20 = vpop.eup %3469  ;;  %v1634_v17 = vmul.f32 %v3468_v19, %v3851_v32  ;;  %v1609_v50 = vpop.xlane.xlu1 %1608 }
 0x37f   :  { %v1632_v52 = vmul.f32 %v3470_v20, %v3853_v36  ;;  %3479 = vrcp.f32 %v1609_v50  ;;  %v1606_v53 = vpop.xlane.xlu0 %1605  ;;  %v2916_v20 = vld [vmem:[%s4087_s2 + $0x50] sm:$0xff] }
 0x380   :  { %3481 = vrcp.f32 %v1606_v53  ;;  %3277 = vmatmul.mubr.msk.f32.vlgmr.msra.gmra.mrb[16].mxu1 %vm1480_vm3, %v1634_v17  ;;  %v2917_v17 = vld [vmem:[%s4087_s2 + $0x58] sm:$0xff] }
 0x381   :  { %v3472_v49 = vpop.eup %3471  ;;  %3272 = vmatmul.mubr.msk.f32.vlgmr.msra.gmra.mrb[28].mxu0 %vm1480_vm3, %v1632_v52  ;;  %3285 = vmatpush3.msra.mxu1 %v3814_v46  ;;  %v3405_v53 = vpack.c.bf16 %v2917_v17, %v2916_v20 }
 0x382   :  { %v3474_v27 = vpop.eup %3473  ;;  %v1638_v54 = vmul.f32 %v3472_v49, %v3861_v41  ;;  %3280 = vmatpush3.msra.mxu0 %v3804_v42  ;;  %v1615_v56 = vpop.xlane.xlu1 %1614  ;;  %3281 = vmatprep.mubr.msk.f32.mxu0 %vm3518_vm1, %v3517_v7 }
 0x383   :  { %v1636_v32 = vmul.f32 %v3474_v27, %v3863_v51  ;;  %3483 = vrcp.f32 %v1615_v56  ;;  %v1612_v36 = vpop.xlane.xlu0 %1611  ;;  %3286 = vmatprep.mubr.msk.f32.mxu1 %vm3518_vm1, %v3517_v7  ;;  %3289 = vmatprep.subr.mxu0 %v3517_v7  ;;  %v2919_v56 = vld [vmem:[%s4087_s2 + $0x68] sm:$0xff] }
 0x384   :  { %3485 = vrcp.f32 %v1612_v36  ;;  %3294 = vmatprep.subr.mxu1 %v3517_v7  ;;  %3287 = vmatmul.mubr.msk.f32.vlgmr.msra.gmra.mrb[18].mxu1 %vm1480_vm3, %v1638_v54  ;;  %v2918_v54 = vld [vmem:[%s4087_s2 + $0x60] sm:$0xff] }
 0x385   :  { %v3476_v46 = vpop.eup %3475  ;;  %3282 = vmatmul.mubr.msk.f32.vlgmr.msra.gmra.mrb[30].mxu0 %vm1480_vm3, %v1636_v32  ;;  %3295 = vmatpush3.msra.mxu1 %v3820_v48 }
 0x386   :  { %v3478_v42 = vpop.eup %3477  ;;  %v1642_v41 = vmul.f32 %v3476_v46, %v3871_v62  ;;  %3290 = vmatpush3.msra.mxu0 %v3806_v43  ;;  %3296 = vmatprep.mubr.msk.f32.mxu1 %vm3518_vm1, %v3517_v7  ;;  %v3409_v46 = vpack.c.bf16 %v2919_v56, %v2918_v54 }
 0x387   :  { %v1640_v51 = vmul.f32 %v3478_v42, %v3873_v55  ;;  %v1618_v28 = vpop.xlane.xlu0 %1617  ;;  %3304 = vmatprep.subr.mxu1 %v3517_v7  ;;  %3291 = vmatprep.mubr.msk.f32.mxu0 %vm3518_vm1, %v3517_v7 }
 0x388   :  { %3487 = vrcp.f32 %v1618_v28  ;;  %v1621_v59 = vpop.xlane.xlu1 %1620  ;;  %3299 = vmatprep.subr.mxu0 %v3517_v7  ;;  %3297 = vmatmul.mubr.msk.f32.vlgmr.msra.gmra.mrb[20].mxu1 %vm1480_vm3, %v1642_v41  ;;  %v2920_v41 = vld [vmem:[%s4087_s2 + $0x70] sm:$0xff] }
 0x389   :  { %v3480_v48 = vpop.eup %3479  ;;  %3489 = vrcp.f32 %v1621_v59  ;;  %3292 = vmatmul.mubr.msk.f32.vlgmr.msra.gmra.mrb[32].mxu0 %vm1480_vm3, %v1640_v51  ;;  %3305 = vmatpush3.msra.mxu1 %v3914_v23  ;;  %v2921_v51 = vld [vmem:[%s4087_s2 + $0x78] sm:$0xff] }
 0x38a   :  { %v3482_v43 = vpop.eup %3481  ;;  %v1646_v62 = vmul.f32 %v3480_v48, %v3879_v33  ;;  %3300 = vmatpush3.msra.mxu0 %v3812_v45  ;;  %3306 = vmatprep.mubr.msk.f32.mxu1 %vm3518_vm1, %v3517_v7  ;;  %v3413_v28 = vpack.c.bf16 %v2921_v51, %v2920_v41 }
 0x38b   :  { %v1644_v55 = vmul.f32 %v3482_v43, %v3882_v5  ;;  %3301 = vmatprep.mubr.msk.f32.mxu0 %vm3518_vm1, %v3517_v7  ;;  %3309 = vmatprep.subr.mxu0 %v3517_v7 }
 0x38c   :  { %3314 = vmatprep.subr.mxu1 %v3517_v7  ;;  %v1624_v63 = vpop.xlane.xlu0 %1623  ;;  %3307 = vmatmul.mubr.msk.f32.vlgmr.msra.gmra.mrb[22].mxu1 %vm1480_vm3, %v1646_v62  ;;  %v292_v10 = vpop.permute.xlu1 %291 }
 0x38d   :  { %v3484_v2 = vpop.eup %3483  ;;  %3491 = vrcp.f32 %v1624_v63  ;;  %3302 = vmatmul.mubr.msk.f32.vlgmr.msra.gmra.mrb[34].mxu0 %vm1480_vm3, %v1644_v55  ;;  %3315 = vmatpush3.msra.mxu1 %v3918_v8 }
 0x38e   :  { %v3486_v45 = vpop.eup %3485  ;;  %v1650_v58 = vmul.f32 %v3484_v2, %v3888_v12  ;;  %3310 = vmatpush3.msra.mxu0 %v3912_v6  ;;  %3311 = vmatprep.mubr.msk.f32.mxu0 %vm3518_vm1, %v3517_v7 }
 0x38f   :  { %v1648_v3 = vmul.f32 %v3486_v45, %v3890_v15  ;;  %3316 = vmatprep.mubr.msk.f32.mxu1 %vm3518_vm1, %v3517_v7  ;;  %3319 = vmatprep.subr.mxu0 %v3517_v7 }
 0x390   :  { %3324 = vmatprep.subr.mxu1 %v3517_v7  ;;  %v290_v4 = vpop.permute.xlu0 %289  ;;  %3317 = vmatmul.mubr.msk.f32.vlgmr.msra.gmra.mrb[24].mxu1 %vm1480_vm3, %v1650_v58 }
 0x391   :  { %3312 = vmatmul.mubr.msk.f32.vlgmr.msra.gmra.mrb[36].mxu0 %vm1480_vm3, %v1648_v3  ;;  %3325 = vmatpush3.msra.mxu1 %v290_v4 }
 0x392   :  { %v3488_v33 = vpop.eup %3487  ;;  %3320 = vmatpush3.msra.mxu0 %v3916_v24  ;;  %3321 = vmatprep.mubr.msk.f32.mxu0 %vm3518_vm1, %v3517_v7  ;;  %v2910_v24 = vld [vmem:[%s4087_s2 + $0x20] sm:$0xff] }
 0x393   :  { %v3490_v34 = vpop.eup %3489  ;;  %v1652_v5 = vmul.f32 %v3488_v33, %v3896_v61  ;;  %3329 = vmatprep.subr.mxu0 %v3517_v7  ;;  %3326 = vmatprep.mubr.msk.f32.mxu1 %vm3518_vm1, %v3517_v7  ;;  %v3393_v8 = vpack.c.bf16 %v2911_v29, %v2910_v24 }
 0x394   :  { %v1654_v9 = vmul.f32 %v3490_v34, %v3898_v18  ;;  %v2906_v18 = vld [vmem:[%s4087_s2] sm:$0xff] }
 0x395   :  { %3322 = vmatmul.mubr.msk.f32.vlgmr.msra.gmra.mrb[38].mxu0 %vm1480_vm3, %v1652_v5 }
 0x396   :  { %3330 = vmatpush3.msra.mxu0 %v292_v10  ;;  %3327 = vmatmul.mubr.msk.f32.vlgmr.msra.gmra.mrb[26].mxu1 %vm1480_vm3, %v1654_v9 }
 0x397   :  { %v3492_v11 = vpop.eup %3491  ;;  %3331 = vmatprep.mubr.msk.f32.mxu0 %vm3518_vm1, %v3517_v7  ;;  %v2907_v7 = vld [vmem:[%s4087_s2 + $0x8] sm:$0xff] }
 0x398   :  { %v1656_v12 = vmul.f32 %v3492_v11, %v3904_v1  ;;  %v3385_v21 = vpack.c.bf16 %v2907_v7, %v2906_v18  ;;  %v2908_v1 = vld [vmem:[%s4087_s2 + $0x10] sm:$0xff] }
 0x399   :  { %v3389_v23 = vpack.c.bf16 %v2909_v22, %v2908_v1  ;;  %v3074_v1 = vld [vmem:[%s4088_s3] ss:$0 sm:$0xff] }
 0x39a   :  { %3332 = vmatmul.mubr.msk.f32.vlgmr.msra.gmra.mrb[40].mxu0 %vm1480_vm3, %v1656_v12  ;;  %3386 = vmatprep.subr.bf16.mxu1 %v3385_v21 }
 0x39b   :  { %3388 = vmatpush3.bf16.msra.mxu1 %v3385_v21 }
 0x39c   :  { %3390 = vmatprep.subr.bf16.mxu1 %v3389_v23 }
 0x39f   :  { %3392 = vmatpush3.bf16.msra.mxu1 %v3389_v23 }
 0x3a0   :  { %3394 = vmatprep.subr.bf16.mxu1 %v3393_v8 }
 0x3a3   :  { %3396 = vmatpush3.bf16.msra.mxu1 %v3393_v8 }
 0x3a4   :  { %3398 = vmatprep.subr.bf16.mxu1 %v3397_v57 }
 0x3a7   :  { %3400 = vmatpush3.bf16.msra.mxu1 %v3397_v57 }
 0x3a8   :  { %3402 = vmatprep.subr.bf16.mxu1 %v3401_v44 }
 0x3ab   :  { %3404 = vmatpush3.bf16.msra.mxu1 %v3401_v44 }
 0x3ac   :  { %3406 = vmatprep.subr.bf16.mxu1 %v3405_v53 }
 0x3af   :  { %3408 = vmatpush3.bf16.msra.mxu1 %v3405_v53 }
 0x3b0   :  { %3410 = vmatprep.subr.bf16.mxu1 %v3409_v46 }
 0x3b3   :  { %3412 = vmatpush3.bf16.msra.mxu1 %v3409_v46 }
 0x3b4   :  { %3414 = vmatprep.subr.bf16.mxu1 %v3413_v28 }
 0x3b7   :  { %3416 = vmatpush3.bf16.msra.mxu1 %v3413_v28 }
 0x403   :  { %v1726_v15 = vpop.f32.mrb[12].mxu1 }
 0x404   :  { %2825 = vst.msk [vmem:[#allocation2] sm:$0xff] %vm295_vm2, %v1726_v15  ;;  %v3258_v16 = vpop.f32.mrb[13].mxu1 }
 0x408   :  { %v1799_v39 = vpop.f32.mrb[26].mxu0 }
 0x409   :  { %2826 = vst.msk [vmem:[#allocation2 + $0x8] sm:$0xff] %vm295_vm2, %v1799_v39  ;;  %v3263_v61 = vpop.f32.mrb[27].mxu0 }
 0x44b   :  { %v1872_v0 = vpop.f32.mrb[14].mxu1 }
 0x44c   :  { %v3268_v6 = vpop.f32.mrb[15].mxu1  ;;  %2829 = vrot.lane.b32.xlu0 %v1872_v0, %s3525_s21 }
 0x453   :  { %v2018_v30 = vpop.f32.mrb[16].mxu1 }
 0x454   :  { %v1945_v25 = vpop.f32.mrb[28].mxu0  ;;  %v3278_v26 = vpop.f32.mrb[17].mxu1  ;;  %2840 = vrot.lane.b32.xlu0 %v2018_v30, %s3524_s20 }
 0x455   :  { %2831 = vrot.lane.b32.xlu1 %v1945_v25, %s3525_s21  ;;  %v3273_v47 = vpop.f32.mrb[29].mxu0 }
 0x457   :  { %v2164_v13 = vpop.f32.mrb[18].mxu1 }
 0x458   :  { %v2091_v38 = vpop.f32.mrb[30].mxu0  ;;  %v3288_v60 = vpop.f32.mrb[19].mxu1  ;;  %2851 = vrot.lane.b32.xlu0 %v2164_v13, %s3523_s19 }
 0x459   :  { %2842 = vrot.lane.b32.xlu1 %v2091_v38, %s3524_s20  ;;  %v3283_v40 = vpop.f32.mrb[31].mxu0 }
 0x45b   :  { %v2310_v19 = vpop.f32.mrb[20].mxu1 }
 0x45c   :  { %v2237_v50 = vpop.f32.mrb[32].mxu0  ;;  %v3298_v52 = vpop.f32.mrb[21].mxu1  ;;  %2862 = vrot.lane.b32.xlu0 %v2310_v19, %s3522_s18 }
 0x45d   :  { %2853 = vrot.lane.b32.xlu1 %v2237_v50, %s3523_s19  ;;  %v3293_v49 = vpop.f32.mrb[33].mxu0 }
 0x45f   :  { %v2456_v27 = vpop.f32.mrb[22].mxu1 }
 0x460   :  { %v2383_v32 = vpop.f32.mrb[34].mxu0  ;;  %2873 = vrot.lane.b32.xlu0 %v2456_v27, %s3521_s17  ;;  %v3308_v36 = vpop.f32.mrb[23].mxu1 }
 0x461   :  { %2864 = vrot.lane.b32.xlu1 %v2383_v32, %s3522_s18  ;;  %v3303_v42 = vpop.f32.mrb[35].mxu0 }
 0x463   :  { %v2602_v59 = vpop.f32.mrb[24].mxu1 }
 0x464   :  { %v2529_v48 = vpop.f32.mrb[36].mxu0  ;;  %2884 = vrot.lane.b32.xlu0 %v2602_v59, %s3520_s1  ;;  %v3318_v43 = vpop.f32.mrb[25].mxu1 }
 0x465   :  { %2875 = vrot.lane.b32.xlu1 %v2529_v48, %s3521_s17  ;;  %v3313_v62 = vpop.f32.mrb[37].mxu0 }
 0x468   :  { %v2675_v55 = vpop.f32.mrb[38].mxu0 }
 0x469   :  { %v2748_v63 = vpop.f32.mrb[26].mxu1  ;;  %2886 = vrot.lane.b32.xlu1 %v2675_v55, %s3520_s1  ;;  %v3323_v2 = vpop.f32.mrb[39].mxu0  ;;  %s3526_s1 = smov [#allocation3]  }
 0x46a   :  { %2895 = vrot.lane.b32.xlu0 %v2748_v63, %s3519_s0  ;;  %v3328_v45 = vpop.f32.mrb[27].mxu1  ;;  %s3011_s17 = sshll.u32 %s3526_s1, 4  ;;  %s3012_s17 = int_to_ptr.vmem [resolvable:$true] %s3011_s17 }
 0x46b   :  { %s3493_s18 = scalar_lea.vmem %s3012_s17, 256  ;;  %p3498_p1 = scmp.lt.s32.totalorder %s3012_s17, %s3012_s17 }
 0x46c   :  { %p3494_p0 = scmp.ne.s32.totalorder %s3012_s17, %s3493_s18  ;;  %p3499_p2 = scmp.lt.s32.totalorder %s3493_s18, %s3493_s18 }
 0x46d   :  { %v2821_v58 = vpop.f32.mrb[40].mxu0 }
 0x46e   :  { %2897 = vrot.lane.b32.xlu1 %v2821_v58, %s3519_s0  ;;  %v3333_v3 = vpop.f32.mrb[41].mxu0  ;;  %p3500_p3 = por %p3499_p2, %p3498_p1 }
 0x470   :  { %p3501_p4 = pnand %p3500_p3, %p3494_p0 }
 0x4be   :  { %v2830_v4 = vpop.permute.xlu0 %2829 }
 0x4bf   :  { %2836 = vst.msk [vmem:[#allocation2] sm:$0xff] %vm2835_vm4, %v2830_v4 }
 0x4c6   :  { %v2841_v33 = vpop.permute.xlu0 %2840 }
 0x4c7   :  { %2847 = vst.msk [vmem:[#allocation2] sm:$0xff] %vm2846_vm5, %v2841_v33  ;;  %v2832_v34 = vpop.permute.xlu1 %2831 }
 0x4c8   :  { %2837 = vst.msk [vmem:[#allocation2 + $0x8] sm:$0xff] %vm2835_vm4, %v2832_v34 }
 0x4ca   :  { %v2852_v5 = vpop.permute.xlu0 %2851 }
 0x4cb   :  { %2858 = vst.msk [vmem:[#allocation2] sm:$0xff] %vm2857_vm6, %v2852_v5  ;;  %v2843_v9 = vpop.permute.xlu1 %2842 }
 0x4cc   :  { %2848 = vst.msk [vmem:[#allocation2 + $0x8] sm:$0xff] %vm2846_vm5, %v2843_v9 }
 0x4ce   :  { %v2863_v10 = vpop.permute.xlu0 %2862 }
 0x4cf   :  { %2869 = vst.msk [vmem:[#allocation2] sm:$0xff] %vm2868_vm7, %v2863_v10  ;;  %v2854_v11 = vpop.permute.xlu1 %2853 }
 0x4d0   :  { %2859 = vst.msk [vmem:[#allocation2 + $0x8] sm:$0xff] %vm2857_vm6, %v2854_v11 }
 0x4d2   :  { %v2874_v12 = vpop.permute.xlu0 %2873 }
 0x4d3   :  { %2880 = vst.msk [vmem:[#allocation2] sm:$0xff] %vm2879_vm8, %v2874_v12  ;;  %v2865_v15 = vpop.permute.xlu1 %2864 }
 0x4d4   :  { %2870 = vst.msk [vmem:[#allocation2 + $0x8] sm:$0xff] %vm2868_vm7, %v2865_v15 }
 0x4d6   :  { %v2885_v16 = vpop.permute.xlu0 %2884 }
 0x4d7   :  { %2891 = vst.msk [vmem:[#allocation2] sm:$0xff] %vm2890_vm9, %v2885_v16  ;;  %v2876_v39 = vpop.permute.xlu1 %2875 }
 0x4d8   :  { %2881 = vst.msk [vmem:[#allocation2 + $0x8] sm:$0xff] %vm2879_vm8, %v2876_v39 }
 0x4db   :  { %v2887_v61 = vpop.permute.xlu1 %2886 }
 0x4dc   :  { %2892 = vst.msk [vmem:[#allocation2 + $0x8] sm:$0xff] %vm2890_vm9, %v2887_v61  ;;  %v2896_v18 = vpop.permute.xlu0 %2895 }
 0x4dd   :  { %2902 = vst.msk [vmem:[#allocation2] sm:$0xff] %vm2901_vm10, %v2896_v18 }
 0x4e0   :  { %v2898_v7 = vpop.permute.xlu1 %2897 }
 0x4e1   :  { %2903 = vst.msk [vmem:[#allocation2 + $0x8] sm:$0xff] %vm2901_vm10, %v2898_v7 }
 0x4e4   :  { %v2904_v21 = vld [vmem:[#allocation2] sm:$0xff] }
 0x4e5   :  { %3366 = vmatprep.mubr.f32.mxu1 %v2904_v21 }
 0x4e8   :  { %v2905_v0 = vld [vmem:[#allocation2 + $0x8] sm:$0xff] }
 0x4e9   :  { %3367 = vmatmul.mubr.f32.vlgmr.msra.gmra.mrb[28].mxu1 %v2905_v0 }
 0x5bc   :  { %v3368_v22 = vpop.f32.mrb[28].mxu1 }
 0x5bd   :  { %v3001_v6 = vadd.f32 %v3368_v22, %v3074_v1  ;;  %v2995_v23 = vpop.f32.mrb[29].mxu1 }
 0x5be   :  { %v2996_v24 = vadd.f32 %v3074_v1, %v2995_v23 }
 0x5bf   :  { %3005 = vst.msk [vmem:[#allocation3 + $0x8] sm:$0xff] %vm32_vm0, %v3001_v6 }
 0x5c0   :  { %3004 = vst.msk [vmem:[#allocation3] sm:$0xff] %vm32_vm0, %v2996_v24 }
 0x5c1   :  { %3504 = shalt.err (!%p3501_p4)
}
 0x5c2   :  { %s3505_s5 = scalar_lea.hbm %s4089_s4, 256 }
 0x5c3   :  { %p3506_p5 = scmp.ne.s32.totalorder %s4089_s4, %s3505_s5  ;;  %p3509_p6 = scmp.lt.u32.totalorder %s3505_s5, %s4089_s4 }
 0x5c5   :  { %p3511_p7 = pnand %p3509_p6, %p3506_p5 }
 0x5c7   :  { %3514 = shalt.err (!%p3511_p7)
}
 0x5c8   :  { %s3527_s10 = smov 128   ;;  %s3528_s11 = smov 8  }
 0x5c9   :  { %3017 = dma.vmem_to_hbm [thread:$0]  %s3012_s17, 256, %s4089_s4, [#allocation4], %s3527_s10, %s3527_s10, %s3528_s11  }
 0x5ca   :  { %3515 = dma.done.wait [#allocation4], 256  }
 0x5cb   :  { %3516 = vsyncadd [#allocation4], 4294967040 }
 0x5cc   :  { %3021 = vsyncpa [#allocation4], 1 }

</bundles_post_ra>
